<compile_context>
chip_gen: v7x
topology: tpu7x:2x2x1
jax: 0.10.0
libtpu: 0.0.40
codegen_flags: <defaults>
</compile_context>

<pallas_src>
import functools

import jax
import jax.numpy as jnp
from jax import lax
from jax.experimental import pallas as pl
from jax.experimental.pallas import tpu as pltpu


def _round_up(x, m):
    return (x + m - 1) // m * m


def _tpu_tile_defaults():
    """(tile_m, tile_n, vmem_limit_bytes, want_two_row_blocks) per TPU generation."""
    vmem_bytes = None
    try:
        info = pltpu.get_tpu_info()
        vmem_bytes = getattr(info, "vmem_capacity_bytes", None)
    except Exception:
        vmem_bytes = None
    if vmem_bytes is None:
        vmem_bytes = 64 * 1024 * 1024  # conservative (v7x per-TC VMEM)

    if vmem_bytes >= 100 * 1024 * 1024:
        # v5e / v6e: 128 MiB VMEM, single TensorCore -> go big, cut X^T re-streaming.
        return 512, 1024, 80 * 1024 * 1024, False
    # v7x: 64 MiB VMEM per TC, 2 TCs -> cap tiles, keep >=2 row blocks for megacore.
    return 256, 512, min(40 * 1024 * 1024, int(vmem_bytes * 0.6)), True


def _binomial_loss_kernel(
    x_ref,        # (tile_m, d_pad)  bf16/f32  row block of X
    xt_ref,       # (d_pad, tile_n)  bf16/f32  col block of X^T
    t_col_ref,    # (tile_m, 1)      i32       labels of row block
    t_row_ref,    # (1, tile_n)      i32       labels of col block
    o_ref,        # (tile_m, 128)    f32       per-row loss (broadcast across lanes)
    acc_ref,      # (tile_m, 8)      f32       [pos_sum, pos_cnt, neg_sum, neg_cnt, ...]
    *, alpha, margin, n_valid, tile_n,
):
    j = pl.program_id(1)
    last_j = pl.num_programs(1) - 1

    @pl.when(j == 0)
    def _():
        acc_ref[...] = jnp.zeros_like(acc_ref)

    # MXU: (tile_m, d_pad) @ (d_pad, tile_n) -> f32 (tile_m, tile_n)
    sim = jnp.dot(x_ref[...], xt_ref[...], preferred_element_type=jnp.float32)

    same = t_col_ref[...] == t_row_ref[...]                      # (tile_m, tile_n)

    # Column-validity mask kept at (1, tile_n); padded columns carry a
    # collision-free sentinel label so `same` is already False there (no
    # full-tile AND needed on the pos branch).
    col_idx = j * tile_n + lax.broadcasted_iota(jnp.int32, (1, tile_n), 1)
    valid = col_idx < n_valid                                    # (1, tile_n)

    pos_mask = same & (sim < 1.0)
    neg_mask = jnp.logical_not(same) & valid                     # broadcast over rows

    # Fused, numerically stable softplus of the branch-selected argument.
    d = sim - margin
    z = d * jnp.where(same, -2.0, alpha)                         # select const, one mul
    sp = jnp.maximum(z, 0.0) + jnp.log(1.0 + jnp.exp(-jnp.abs(z)))

    acc_ref[:, 0:1] += jnp.sum(jnp.where(pos_mask, sp, 0.0), axis=1, keepdims=True)
    acc_ref[:, 1:2] += jnp.sum(pos_mask.astype(jnp.float32), axis=1, keepdims=True)
    acc_ref[:, 2:3] += jnp.sum(jnp.where(neg_mask, sp, 0.0), axis=1, keepdims=True)
    acc_ref[:, 3:4] += jnp.sum(neg_mask.astype(jnp.float32), axis=1, keepdims=True)

    @pl.when(j == last_j)
    def _():
        ps = acc_ref[:, 0:1]
        pc = acc_ref[:, 1:2]
        ns = acc_ref[:, 2:3]
        nc = acc_ref[:, 3:4]
        pos_mean = jnp.where(pc > 0.0, ps / jnp.maximum(pc, 1.0), 0.0)
        neg_mean = jnp.where(nc > 0.0, ns / jnp.maximum(nc, 1.0), 0.0)
        row_loss = pos_mean + neg_mean                           # (tile_m, 1)
        o_ref[...] = jnp.broadcast_to(row_loss, o_ref.shape)     # lane-dense store


def binomial_loss(inputs, targets, *, alpha=25.0, margin=0.5,
                  tile_m=None, tile_n=None, matmul_dtype=jnp.bfloat16,
                  vmem_limit_bytes=None):
    """inputs: (N, D) float embeddings; targets: (N,) integer labels -> scalar loss."""
    n, d = inputs.shape
    d_pad = _round_up(d, 128)

    dft_tm, dft_tn, dft_vmem, want_two_row_blocks = _tpu_tile_defaults()
    tile_m = dft_tm if tile_m is None else int(tile_m)
    tile_n = dft_tn if tile_n is None else int(tile_n)
    vmem_limit_bytes = dft_vmem if vmem_limit_bytes is None else int(vmem_limit_bytes)

    # Tile sizes: multiples of (8, 128); clamp for small problems.
    tile_m = _round_up(max(8, tile_m), 8)
    tile_n = _round_up(max(128, tile_n), 128)
    tile_m = min(tile_m, _round_up(n, 8))
    tile_n = min(tile_n, _round_up(n, 128))
    # On 2-TC parts ("parallel" row axis is sharded across cores) keep >= 2 row blocks.
    if want_two_row_blocks and (_round_up(n, tile_m) // tile_m) < 2 and tile_m > 8:
        tile_m = _round_up((tile_m + 1) // 2, 8)
    n_rows = _round_up(n, tile_m)
    n_cols = _round_up(n, tile_n)

    x = inputs.astype(jnp.float32)
    xq = x.astype(matmul_dtype)                     # bf16 operands, f32 MXU accumulation
    x_rows = jnp.zeros((n_rows, d_pad), matmul_dtype).at[:n, :d].set(xq)
    x_cols = jnp.zeros((d_pad, n_cols), matmul_dtype).at[:d, :n].set(xq.T)

    t = targets.astype(jnp.int32)
    # Collision-free sentinels (labels may legitimately be negative).
    col_sent = jnp.min(t) - 1
    row_sent = jnp.min(t) - 2
    t_col = jnp.full((n_rows, 1), row_sent, jnp.int32).at[:n, 0].set(t)
    t_row = jnp.full((1, n_cols), col_sent, jnp.int32).at[0, :n].set(t)

    grid = (n_rows // tile_m, n_cols // tile_n)
    kernel = functools.partial(
        _binomial_loss_kernel,
        alpha=float(alpha), margin=float(margin), n_valid=n, tile_n=tile_n,
    )

    out = pl.pallas_call(
        kernel,
        out_shape=jax.ShapeDtypeStruct((n_rows, 128), jnp.float32),
        grid_spec=pltpu.PrefetchScalarGridSpec(
            num_scalar_prefetch=0,
            grid=grid,
            in_specs=[
                pl.BlockSpec((tile_m, d_pad), lambda i, j: (i, 0)),
                pl.BlockSpec((d_pad, tile_n), lambda i, j: (0, j)),
                pl.BlockSpec((tile_m, 1), lambda i, j: (i, 0)),
                pl.BlockSpec((1, tile_n), lambda i, j: (0, j)),
            ],
            out_specs=pl.BlockSpec((tile_m, 128), lambda i, j: (i, 0)),
            scratch_shapes=[pltpu.VMEM((tile_m, 8), jnp.float32)],
        ),
        compiler_params=pltpu.CompilerParams(
            dimension_semantics=("parallel", "arbitrary"),
            vmem_limit_bytes=vmem_limit_bytes,
        ),
    )(x_rows, x_cols, t_col, t_row)

    return jnp.sum(out[:n, 0]) / jnp.float32(n)


def _reference_loss(inputs, targets, alpha=25.0, margin=0.5):
    # Pure-JAX reference mirroring the PyTorch loop.
    n = inputs.shape[0]
    sim = inputs @ inputs.T
    same = targets[:, None] == targets[None, :]
    pos_mask = same & (sim < 1.0)
    neg_mask = ~same
    pos_vals = jnp.log(1.0 + jnp.exp(-2.0 * (sim - margin)))
    neg_vals = jnp.log(1.0 + jnp.exp(alpha * (sim - margin)))
    pos_sum = jnp.sum(jnp.where(pos_mask, pos_vals, 0.0), axis=1)
    pos_cnt = jnp.sum(pos_mask, axis=1)
    neg_sum = jnp.sum(jnp.where(neg_mask, neg_vals, 0.0), axis=1)
    neg_cnt = jnp.sum(neg_mask, axis=1)
    pos_mean = jnp.where(pos_cnt > 0, pos_sum / jnp.maximum(pos_cnt, 1), 0.0)
    neg_mean = jnp.where(neg_cnt > 0, neg_sum / jnp.maximum(neg_cnt, 1), 0.0)
    return jnp.sum(pos_mean + neg_mean) / n


if __name__ == "__main__":
    key = jax.random.PRNGKey(0)

    # --- small case (single grid point) ---
    n, d = 8, 32
    k1, k2, key = jax.random.split(key, 3)
    x = jax.random.normal(k1, (n, d), dtype=jnp.float32)
    # Scale slightly below unit norm so the sim<1 self-pair test is unambiguous
    # for both the kernel and the reference (avoids boundary flakiness).
    x = 0.9 * x / jnp.linalg.norm(x, axis=1, keepdims=True)
    targets = jnp.array([0, 0, 1, 1, 2, 2, 3, 3], dtype=jnp.int32)

    # bf16-MXU path: compare against a reference fed the identically bf16-rounded
    # inputs (isolates kernel correctness from the quantization choice).
    x_q = x.astype(jnp.bfloat16).astype(jnp.float32)
    loss = jax.block_until_ready(binomial_loss(x, targets))
    ref_q = jax.block_until_ready(_reference_loss(x_q, targets))
    assert jnp.allclose(loss, ref_q, rtol=2e-3, atol=1e-4), (loss, ref_q)

    # Exact f32 operand path against the exact f32 reference.
    loss_f32 = jax.block_until_ready(
        binomial_loss(x, targets, matmul_dtype=jnp.float32))
    ref = jax.block_until_ready(_reference_loss(x, targets))
    assert jnp.allclose(loss_f32, ref, rtol=1e-4, atol=1e-5), (loss_f32, ref)

    # --- larger case: multi-block grid + remainder-column masking + negative labels ---
    n2, d2 = 300, 48
    x2 = jax.random.normal(k2, (n2, d2), dtype=jnp.float32)
    x2 = 0.9 * x2 / jnp.linalg.norm(x2, axis=1, keepdims=True)
    t2 = jax.random.randint(key, (n2,), -2, 10, dtype=jnp.int32)  # includes negatives

    x2_q = x2.astype(jnp.bfloat16).astype(jnp.float32)
    loss2 = jax.block_until_ready(binomial_loss(x2, t2, tile_m=128, tile_n=128))
    ref2_q = jax.block_until_ready(_reference_loss(x2_q, t2))
    assert jnp.allclose(loss2, ref2_q, rtol=2e-3, atol=1e-4), (loss2, ref2_q)

    loss2_f32 = jax.block_until_ready(
        binomial_loss(x2, t2, tile_m=128, tile_n=128, matmul_dtype=jnp.float32))
    ref2 = jax.block_until_ready(_reference_loss(x2, t2))
    assert jnp.allclose(loss2_f32, ref2, rtol=1e-4, atol=1e-5), (loss2_f32, ref2)

    print("KERNEL_OK")
</pallas_src>

<mosaic_0001>
module attributes {stable_mosaic.version = 11 : i64} {
  func.func @_binomial_loss_kernel(%arg0: i32, %arg1: i32, %arg2: memref<8x128xbf16, #tpu.memory_space<vmem>>, %arg3: memref<128x128xbf16, #tpu.memory_space<vmem>>, %arg4: memref<8x1xi32, #tpu.memory_space<vmem>>, %arg5: memref<1x128xi32, #tpu.memory_space<vmem>>, %arg6: memref<8x128xf32, #tpu.memory_space<vmem>>, %arg7: memref<8x8xf32, #tpu.memory_space<vmem>>) attributes {dimension_semantics = [#tpu.dimension_semantics<parallel>, #tpu.dimension_semantics<arbitrary>], iteration_bounds = array<i64: 1, 1>, scalar_prefetch = 0 : i64, scratch_operands = 1 : i64, tpu.core_type = #tpu.core_type<tc>, window_params = [{transform_indices = @transform_0, window_bounds = array<i64: 8, 128>}, {transform_indices = @transform_1, window_bounds = array<i64: 128, 128>}, {transform_indices = @transform_2, window_bounds = array<i64: 8, 1>}, {transform_indices = @transform_3, window_bounds = array<i64: 1, 128>}, {transform_indices = @transform_4, window_bounds = array<i64: 8, 128>}]} {
    %c0_i32 = arith.constant 0 : i32
    %0 = arith.cmpi eq, %arg1, %c0_i32 : i32
    %1 = arith.extui %0 : i1 to i32
    %c0_i32_0 = arith.constant 0 : i32
    %2 = arith.cmpi ne, %1, %c0_i32_0 : i32
    scf.if %2 {
      %cst_37 = arith.constant 0.000000e+00 : f32
      %70 = vector.broadcast %cst_37 : f32 to vector<8x8xf32>
      %c0_38 = arith.constant 0 : index
      %c0_39 = arith.constant 0 : index
      %71 = vector.load %arg7[%c0_38, %c0_39] : memref<8x8xf32, #tpu.memory_space<vmem>>, vector<8x8xf32>
      tpu.vector_store %arg7[%c0_38, %c0_39], %70 {strides = array<i32>} : memref<8x8xf32, #tpu.memory_space<vmem>>, vector<8x8xf32>,
    } else {
    }
    %c0 = arith.constant 0 : index
    %c0_1 = arith.constant 0 : index
    %3 = vector.load %arg2[%c0, %c0_1] : memref<8x128xbf16, #tpu.memory_space<vmem>>, vector<8x128xbf16>
    %c0_2 = arith.constant 0 : index
    %c0_3 = arith.constant 0 : index
    %4 = vector.load %arg3[%c0_2, %c0_3] : memref<128x128xbf16, #tpu.memory_space<vmem>>, vector<128x128xbf16>
    %cst = arith.constant dense<0.000000e+00> : vector<8x128xf32>
    %5 = tpu.matmul %3, %4, %cst {dimension_numbers = #tpu.dot_dimension_numbers<[1], [0], [0], [1], [0, 0, 1, 1], [], []>} : vector<8x128xbf16>, vector<128x128xbf16>, vector<8x128xf32> -> vector<8x128xf32>
    %c0_4 = arith.constant 0 : index
    %c0_5 = arith.constant 0 : index
    %6 = vector.load %arg4[%c0_4, %c0_5] : memref<8x1xi32, #tpu.memory_space<vmem>>, vector<8x1xi32>
    %c0_6 = arith.constant 0 : index
    %c0_7 = arith.constant 0 : index
    %7 = vector.load %arg5[%c0_6, %c0_7] : memref<1x128xi32, #tpu.memory_space<vmem>>, vector<1x128xi32>
    %8 = vector.broadcast %6 : vector<8x1xi32> to vector<8x128xi32>
    %9 = vector.broadcast %7 : vector<1x128xi32> to vector<8x128xi32>
    %10 = arith.cmpi eq, %8, %9 : vector<8x128xi32>
    %c128_i32 = arith.constant 128 : i32
    %11 = arith.muli %arg1, %c128_i32 : i32
    %12 = tpu.iota {dimensions = array<i32: 1>} : vector<1x128xi32>
    %13 = vector.broadcast %11 : i32 to vector<1x128xi32>
    %14 = arith.addi %13, %12 : vector<1x128xi32>
    %c8_i32 = arith.constant 8 : i32
    %15 = vector.broadcast %c8_i32 : i32 to vector<1x128xi32>
    %16 = arith.cmpi slt, %14, %15 : vector<1x128xi32>
    %cst_8 = arith.constant 1.000000e+00 : f32
    %17 = vector.broadcast %cst_8 : f32 to vector<8x128xf32>
    %18 = arith.cmpf olt, %5, %17 : vector<8x128xf32>
    %19 = arith.andi %10, %18 : vector<8x128xi1>
    %cst_9 = arith.constant dense<true> : vector<8x128xi1>
    %20 = arith.xori %10, %cst_9 : vector<8x128xi1>
    %21 = vector.broadcast %16 : vector<1x128xi1> to vector<8x128xi1>
    %22 = arith.andi %20, %21 : vector<8x128xi1>
    %cst_10 = arith.constant 5.000000e-01 : f32
    %23 = vector.broadcast %cst_10 : f32 to vector<8x128xf32>
    %24 = arith.subf %5, %23 : vector<8x128xf32>
    %cst_11 = arith.constant -2.000000e+00 : f32
    %cst_12 = arith.constant 2.500000e+01 : f32
    %25 = vector.broadcast %cst_11 : f32 to vector<8x128xf32>
    %26 = vector.broadcast %cst_12 : f32 to vector<8x128xf32>
    %27 = arith.select %10, %25, %26 : vector<8x128xi1>, vector<8x128xf32>
    %28 = arith.mulf %24, %27 : vector<8x128xf32>
    %cst_13 = arith.constant 0.000000e+00 : f32
    %29 = vector.broadcast %cst_13 : f32 to vector<8x128xf32>
    %30 = arith.maximumf %28, %29 : vector<8x128xf32>
    %31 = math.absf %28 : vector<8x128xf32>
    %cst_14 = arith.constant 0.000000e+00 : f32
    %32 = vector.broadcast %cst_14 : f32 to vector<8x128xf32>
    %33 = arith.subf %32, %31 : vector<8x128xf32>
    %34 = math.exp %33 : vector<8x128xf32>
    %cst_15 = arith.constant 1.000000e+00 : f32
    %35 = vector.broadcast %cst_15 : f32 to vector<8x128xf32>
    %36 = arith.addf %35, %34 : vector<8x128xf32>
    %37 = math.log %36 : vector<8x128xf32>
    %38 = arith.addf %30, %37 : vector<8x128xf32>
    %c0_16 = arith.constant 0 : index
    %c0_17 = arith.constant 0 : index
    %39 = vector.load %arg7[%c0_16, %c0_17] : memref<8x8xf32, #tpu.memory_space<vmem>>, vector<8x1xf32>
    %cst_18 = arith.constant 0.000000e+00 : f32
    %40 = vector.broadcast %cst_18 : f32 to vector<8x128xf32>
    %41 = arith.select %19, %38, %40 : vector<8x128xi1>, vector<8x128xf32>
    %cst_19 = arith.constant dense<0.000000e+00> : vector<8xf32>
    %42 = vector.multi_reduction <add>, %41, %cst_19 [1] : vector<8x128xf32> to vector<8xf32>
    %43 = vector.shape_cast %42 : vector<8xf32> to vector<8x1xf32>
    %44 = arith.addf %39, %43 : vector<8x1xf32>
    %c0_20 = arith.constant 0 : index
    %c0_21 = arith.constant 0 : index
    %45 = vector.load %arg7[%c0_20, %c0_21] : memref<8x8xf32, #tpu.memory_space<vmem>>, vector<8x1xf32>
    tpu.vector_store %arg7[%c0_20, %c0_21], %44 {strides = array<i32>} : memref<8x8xf32, #tpu.memory_space<vmem>>, vector<8x1xf32>,
    %c0_22 = arith.constant 0 : index
    %c1 = arith.constant 1 : index
    %46 = vector.load %arg7[%c0_22, %c1] : memref<8x8xf32, #tpu.memory_space<vmem>>, vector<8x1xf32>
    %47 = arith.extui %19 : vector<8x128xi1> to vector<8x128xi32>
    %48 = arith.sitofp %47 : vector<8x128xi32> to vector<8x128xf32>
    %cst_23 = arith.constant dense<0.000000e+00> : vector<8xf32>
    %49 = vector.multi_reduction <add>, %48, %cst_23 [1] : vector<8x128xf32> to vector<8xf32>
    %50 = vector.shape_cast %49 : vector<8xf32> to vector<8x1xf32>
    %51 = arith.addf %46, %50 : vector<8x1xf32>
    %c0_24 = arith.constant 0 : index
    %c1_25 = arith.constant 1 : index
    %52 = vector.load %arg7[%c0_24, %c1_25] : memref<8x8xf32, #tpu.memory_space<vmem>>, vector<8x1xf32>
    tpu.vector_store %arg7[%c0_24, %c1_25], %51 {strides = array<i32>} : memref<8x8xf32, #tpu.memory_space<vmem>>, vector<8x1xf32>,
    %c0_26 = arith.constant 0 : index
    %c2 = arith.constant 2 : index
    %53 = vector.load %arg7[%c0_26, %c2] : memref<8x8xf32, #tpu.memory_space<vmem>>, vector<8x1xf32>
    %cst_27 = arith.constant 0.000000e+00 : f32
    %54 = vector.broadcast %cst_27 : f32 to vector<8x128xf32>
    %55 = arith.select %22, %38, %54 : vector<8x128xi1>, vector<8x128xf32>
    %cst_28 = arith.constant dense<0.000000e+00> : vector<8xf32>
    %56 = vector.multi_reduction <add>, %55, %cst_28 [1] : vector<8x128xf32> to vector<8xf32>
    %57 = vector.shape_cast %56 : vector<8xf32> to vector<8x1xf32>
    %58 = arith.addf %53, %57 : vector<8x1xf32>
    %c0_29 = arith.constant 0 : index
    %c2_30 = arith.constant 2 : index
    %59 = vector.load %arg7[%c0_29, %c2_30] : memref<8x8xf32, #tpu.memory_space<vmem>>, vector<8x1xf32>
    tpu.vector_store %arg7[%c0_29, %c2_30], %58 {strides = array<i32>} : memref<8x8xf32, #tpu.memory_space<vmem>>, vector<8x1xf32>,
    %c0_31 = arith.constant 0 : index
    %c3 = arith.constant 3 : index
    %60 = vector.load %arg7[%c0_31, %c3] : memref<8x8xf32, #tpu.memory_space<vmem>>, vector<8x1xf32>
    %61 = arith.extui %22 : vector<8x128xi1> to vector<8x128xi32>
    %62 = arith.sitofp %61 : vector<8x128xi32> to vector<8x128xf32>
    %cst_32 = arith.constant dense<0.000000e+00> : vector<8xf32>
    %63 = vector.multi_reduction <add>, %62, %cst_32 [1] : vector<8x128xf32> to vector<8xf32>
    %64 = vector.shape_cast %63 : vector<8xf32> to vector<8x1xf32>
    %65 = arith.addf %60, %64 : vector<8x1xf32>
    %c0_33 = arith.constant 0 : index
    %c3_34 = arith.constant 3 : index
    %66 = vector.load %arg7[%c0_33, %c3_34] : memref<8x8xf32, #tpu.memory_space<vmem>>, vector<8x1xf32>
    tpu.vector_store %arg7[%c0_33, %c3_34], %65 {strides = array<i32>} : memref<8x8xf32, #tpu.memory_space<vmem>>, vector<8x1xf32>,
    %c0_i32_35 = arith.constant 0 : i32
    %67 = arith.cmpi eq, %arg1, %c0_i32_35 : i32
    %68 = arith.extui %67 : i1 to i32
    %c0_i32_36 = arith.constant 0 : i32
    %69 = arith.cmpi ne, %68, %c0_i32_36 : i32
    scf.if %69 {
      %c0_37 = arith.constant 0 : index
      %c0_38 = arith.constant 0 : index
      %70 = vector.load %arg7[%c0_37, %c0_38] : memref<8x8xf32, #tpu.memory_space<vmem>>, vector<8x1xf32>
      %c0_39 = arith.constant 0 : index
      %c1_40 = arith.constant 1 : index
      %71 = vector.load %arg7[%c0_39, %c1_40] : memref<8x8xf32, #tpu.memory_space<vmem>>, vector<8x1xf32>
      %c0_41 = arith.constant 0 : index
      %c2_42 = arith.constant 2 : index
      %72 = vector.load %arg7[%c0_41, %c2_42] : memref<8x8xf32, #tpu.memory_space<vmem>>, vector<8x1xf32>
      %c0_43 = arith.constant 0 : index
      %c3_44 = arith.constant 3 : index
      %73 = vector.load %arg7[%c0_43, %c3_44] : memref<8x8xf32, #tpu.memory_space<vmem>>, vector<8x1xf32>
      %cst_45 = arith.constant 0.000000e+00 : f32
      %74 = vector.broadcast %cst_45 : f32 to vector<8x1xf32>
      %75 = arith.cmpf ogt, %71, %74 : vector<8x1xf32>
      %cst_46 = arith.constant 1.000000e+00 : f32
      %76 = vector.broadcast %cst_46 : f32 to vector<8x1xf32>
      %77 = arith.maximumf %71, %76 : vector<8x1xf32>
      %78 = arith.divf %70, %77 : vector<8x1xf32>
      %cst_47 = arith.constant 0.000000e+00 : f32
      %79 = vector.broadcast %cst_47 : f32 to vector<8x1xf32>
      %80 = arith.select %75, %78, %79 : vector<8x1xi1>, vector<8x1xf32>
      %cst_48 = arith.constant 0.000000e+00 : f32
      %81 = vector.broadcast %cst_48 : f32 to vector<8x1xf32>
      %82 = arith.cmpf ogt, %73, %81 : vector<8x1xf32>
      %cst_49 = arith.constant 1.000000e+00 : f32
      %83 = vector.broadcast %cst_49 : f32 to vector<8x1xf32>
      %84 = arith.maximumf %73, %83 : vector<8x1xf32>
      %85 = arith.divf %72, %84 : vector<8x1xf32>
      %cst_50 = arith.constant 0.000000e+00 : f32
      %86 = vector.broadcast %cst_50 : f32 to vector<8x1xf32>
      %87 = arith.select %82, %85, %86 : vector<8x1xi1>, vector<8x1xf32>
      %88 = arith.addf %80, %87 : vector<8x1xf32>
      %89 = vector.shape_cast %88 : vector<8x1xf32> to vector<8x1xf32>
      %90 = vector.broadcast %89 : vector<8x1xf32> to vector<8x128xf32>
      %c0_51 = arith.constant 0 : index
      %c0_52 = arith.constant 0 : index
      %91 = vector.load %arg6[%c0_51, %c0_52] : memref<8x128xf32, #tpu.memory_space<vmem>>, vector<8x128xf32>
      tpu.vector_store %arg6[%c0_51, %c0_52], %90 {strides = array<i32>} : memref<8x128xf32, #tpu.memory_space<vmem>>, vector<8x128xf32>,
    } else {
    }
    return
  }
  func.func @transform_0(%arg0: i32, %arg1: i32) -> (i32, i32) {
    %c0_i32 = arith.constant 0 : i32
    %c0_i32_0 = arith.constant 0 : i32
    return %arg0, %c0_i32 : i32, i32
  }
  func.func @transform_1(%arg0: i32, %arg1: i32) -> (i32, i32) {
    %c0_i32 = arith.constant 0 : i32
    %c0_i32_0 = arith.constant 0 : i32
    return %c0_i32, %arg1 : i32, i32
  }
  func.func @transform_2(%arg0: i32, %arg1: i32) -> (i32, i32) {
    %c0_i32 = arith.constant 0 : i32
    %c0_i32_0 = arith.constant 0 : i32
    return %arg0, %c0_i32 : i32, i32
  }
  func.func @transform_3(%arg0: i32, %arg1: i32) -> (i32, i32) {
    %c0_i32 = arith.constant 0 : i32
    %c0_i32_0 = arith.constant 0 : i32
    return %c0_i32, %arg1 : i32, i32
  }
  func.func @transform_4(%arg0: i32, %arg1: i32) -> (i32, i32) {
    %c0_i32 = arith.constant 0 : i32
    %c0_i32_0 = arith.constant 0 : i32
    return %arg0, %c0_i32 : i32, i32
  }
}

</mosaic_0001>

<bundles_post_ra>
// kernel: tpu_custom_call.1
= control target key start
LH: loop header
LB: loop body
LE: loop exit
PB: predicated region body
PF: predicated region fallthrough
CT: control target
= control target key end

     0   :  { %9 = vsyncpa [#allocation4], 0  ;;  %s463_s0 = inlined_call_operand.vmem [shape: bf16[8,128], index: 0, kind: input, shape index: {}]   ;;  %s464_s1 = inlined_call_operand.hbm [shape: bf16[128,128], index: 1, kind: input, shape index: {}]   ;;  %s465_s2 = inlined_call_operand.vmem [shape: s32[8,1], index: 2, kind: input, shape index: {}]   ;;  %s466_s3 = inlined_call_operand.vmem [shape: s32[1,128], index: 3, kind: input, shape index: {}]   ;;  %s467_s4 = inlined_call_operand.hbm [shape: f32[8,128], index: 4, kind: output, shape index: {}]  }
   0x1   :  { %10 = vsyncpa [#allocation5], 0  ;;  %s369_s15 = smov [#allocation3]   ;;  %s321_s19 = scalar_lea.hbm %s464_s1, 1024 }
   0x2   :  { %s18_s16 = sshll.u32 %s369_s15, 4  ;;  %p322_p0 = scmp.ne.s32.totalorder %s464_s1, %s321_s19  ;;  %s19_s16 = int_to_ptr.vmem [resolvable:$true] %s18_s16 }
   0x3   :  { %p325_p1 = scmp.lt.u32.totalorder %s321_s19, %s464_s1 }
   0x5   :  { %p327_p2 = pnand %p325_p1, %p322_p0 }
   0x7   :  { %330 = shalt.err (!%p327_p2)
}
   0x8   :  { %s331_s24 = scalar_lea.vmem %s19_s16, 1024  ;;  %p336_p4 = scmp.lt.s32.totalorder %s19_s16, %s19_s16 }
   0x9   :  { %p332_p3 = scmp.ne.s32.totalorder %s19_s16, %s331_s24  ;;  %p337_p5 = scmp.lt.s32.totalorder %s331_s24, %s331_s24 }
   0xb   :  { %p338_p6 = por %p337_p5, %p336_p4 }
   0xd   :  { %p339_p7 = pnand %p338_p6, %p332_p3 }
   0xf   :  { %342 = shalt.err (!%p339_p7)
}
  0x10   :  { %s370_s25 = smov 64   ;;  %s371_s26 = smov 4  }
  0x11   :  { %24 = dma.hbm_to_vmem [thread:$0]  %s464_s1, 1024, %s19_s16, [#allocation4], %s370_s25, %s370_s25, %s371_s26  }
  0x12   :  { %365 = dma.done.wait [#allocation4], 1024  }
  0x13   :  { %366 = vsyncadd [#allocation4], 4294966272  ;;  %v372_v0 = vmov 0.0   ;;  %vm373_vm0 = vmmov 0   ;;  %v374_v1 = vmov 0   ;;  %v307_v2 = vld [vmem:[#allocation3] sm:$0xff]   ;;  %v155_v29 = vlaneseq }
  0x14   :  { %272 = vmatprep.subr.bf16.mxu0 %v372_v0  ;;  %288 = vmatprep.mubr.msk.bf16.mxu0 %vm373_vm0, %v372_v0  ;;  %v308_v3 = vld [vmem:[#allocation3 + $0x8] sm:$0xff]   ;;  %v309_v4 = vld [vmem:[#allocation3 + $0x10] sm:$0xff]   ;;  %v144_v5 = vld [vmem:[%s465_s2] sm:$0xff]  ;;  %v375_v14 = vmov 25.0   ;;  %vm376_vm5 = vmmov 1   ;;  %vm37_vm8 = vcmask 64512  }
  0x15   :  { %305 = vset.pattern.permute.xlu0 %v374_v1  ;;  %273 = vmatpush3.bf16.msra.mxu0 %v307_v2  ;;  %v310_v6 = vld [vmem:[#allocation3 + $0x18] sm:$0xff]   ;;  %v311_v7 = vld [vmem:[#allocation3 + $0x20] sm:$0xff]   ;;  %v312_v8 = vld [vmem:[#allocation3 + $0x28] sm:$0xff]   ;;  %v156_v30 = vand.u32 127, %v155_v29  ;;  %38 = vst.msk [vmem:[#allocation2] sm:$0xff] %vm37_vm8, %v372_v0  ;;  %vm183_vm9 = vcmask 7168  }
  0x16   :  { %274 = vmatprep.subr.bf16.mxu0 %v372_v0  ;;  %147 = vperm.xlu0 %305, %v144_v5   ;;  %v313_v9 = vld [vmem:[#allocation3 + $0x30] sm:$0xff]   ;;  %v314_v10 = vld [vmem:[#allocation3 + $0x38] sm:$0xff]   ;;  %vm191_vm10 = vcmask 15368   ;;  %vm198_vm11 = vcmask 23568   ;;  %vm206_vm12 = vcmask 31768   ;;  %v379_v55 = vmov 1  }
  0x17   :  { %v39_v11 = vld [vmem:[%s463_s0] sm:$0xf]  ;;  %vm159_vm4 = vcmp.lt.s32.totalorder %v156_v30, 8  ;;  %s377_s0 = smov 127   ;;  %s380_s7 = smov 126  }
  0x18   :  { %v259_v12 = vld [vmem:[%s466_s3] ss:$0 sm:$0xff]  ;;  %s378_s3 = smov 1   ;;  %s381_s8 = smov [#allocation6]  }
  0x19   :  { %275 = vmatpush3.bf16.msra.mxu0 %v308_v3  ;;  %s242_s9 = sshll.u32 %s381_s8, 4  ;;  %s243_s9 = int_to_ptr.vmem [resolvable:$true] %s242_s9 }
  0x1a   :  { %276 = vmatprep.subr.bf16.mxu0 %v372_v0  ;;  %306 = vset.pattern.permute.xlu0 %v379_v55  ;;  %s343_s10 = scalar_lea.vmem %s243_s9, 128  ;;  %p348_p9 = scmp.lt.s32.totalorder %s243_s9, %s243_s9 }
  0x1b   :  { %p344_p8 = scmp.ne.s32.totalorder %s243_s9, %s343_s10  ;;  %p349_p10 = scmp.lt.s32.totalorder %s343_s10, %s343_s10 }
  0x1c   :  { %v178_v38 = vld [vmem:[#allocation2] sm:$0xff] }
  0x1d   :  { %277 = vmatpush3.bf16.msra.mxu0 %v309_v4  ;;  %p350_p11 = por %p349_p10, %p348_p9 }
  0x1e   :  { %278 = vmatprep.subr.bf16.mxu0 %v372_v0 }
  0x1f   :  { %p351_p12 = pnand %p350_p11, %p344_p8 }
  0x21   :  { %279 = vmatpush3.bf16.msra.mxu0 %v310_v6 }
  0x22   :  { %280 = vmatprep.subr.bf16.mxu0 %v372_v0 }
  0x25   :  { %281 = vmatpush3.bf16.msra.mxu0 %v311_v7 }
  0x26   :  { %282 = vmatprep.subr.bf16.mxu0 %v372_v0 }
  0x29   :  { %283 = vmatpush3.bf16.msra.mxu0 %v312_v8 }
  0x2a   :  { %284 = vmatprep.subr.bf16.mxu0 %v372_v0 }
  0x2d   :  { %285 = vmatpush3.bf16.msra.mxu0 %v313_v9 }
  0x2e   :  { %286 = vmatprep.subr.bf16.mxu0 %v372_v0 }
  0x31   :  { %287 = vmatpush3.bf16.msra.mxu0 %v314_v10 }
  0x34   :  { %289 = vmatmul.mubr.bf16.vlgmr.msra.gmra.mrb[0].mxu0 %v39_v11 }
  0x95   :  { %v148_v13 = vpop.permute.xlu0 %147 }
  0x96   :  { %vm153_vm1 = vcmp.eq.s32.totalorder %v148_v13, %v259_v12 }
  0x97   :  { %v167_v15 = vsel %vm153_vm1, -2.0, %v375_v14  ;;  %vm162_vm6 = vmxor %vm153_vm1, %vm376_vm5 }
  0x98   :  { %vm165_vm7 = vmand %vm162_vm6, %vm159_vm4 }
  0x99   :  { %v262_v37 = vsel %vm165_vm7, 1.0, %v372_v0 }
 0x107   :  { %v138_v16 = vpop.f32.mrb[0].mxu0 }
 0x108   :  { %v260_v17 = vadd.f32 -0.5, %v138_v16  ;;  %v290_v18 = vpop.f32.mrb[1].mxu0  ;;  %vm160_vm2 = vcmp.lt.f32.partialorder %v138_v16, 1.0 }
 0x109   :  { %v141_v19 = vpop.f32.mrb[2].mxu0  ;;  %vm439_vm3 = vmand %vm153_vm1, %vm160_vm2 }
 0x10a   :  { %v168_v21 = vmul.f32 %v260_v17, %v167_v15  ;;  %v291_v22 = vpop.f32.mrb[3].mxu0  ;;  %v261_v23 = vsel %vm439_vm3, 1.0, %v372_v0 }
 0x10b   :  { %188 = vadd.xlane.f32.xlu1 %v261_v23 }
 0x10c   :  { %v170_v24 = vand.u32 2147483647, %v168_v21  ;;  %v169_v32 = vmax.f32 %v168_v21, 0.0 }
 0x10e   :  { %v171_v25 = vsub.f32 0.0, %v170_v24 }
 0x110   :  { %v172_v26 = vmul.f32 1.442695, %v171_v25 }
 0x112   :  { %315 = vpow2.f32 %v172_v26 }
 0x11c   :  { %v316_v27 = vpop.eup %315 }
 0x11d   :  { %v174_v28 = vadd.f32 1.0, %v316_v27 }
 0x11f   :  { %317 = vlog2.f32 %v174_v28 }
 0x129   :  { %v318_v31 = vpop.eup %317 }
 0x12a   :  { %v176_v33 = vmul.f32 0.6931472, %v318_v31 }
 0x12c   :  { %v177_v34 = vadd.f32 %v176_v33, %v169_v32 }
 0x12e   :  { %v194_v35 = vsel %vm165_vm7, %v177_v34, 0.0  ;;  %v179_v36 = vsel %vm439_vm3, %v177_v34, 0.0 }
 0x12f   :  { %195 = vadd.xlane.f32.xlu1 %v194_v35  ;;  %180 = vadd.xlane.f32.xlu0 %v179_v36 }
 0x133   :  { %203 = vadd.xlane.f32.xlu1 %v262_v37 }
 0x198   :  { %v189_v41 = vpop.xlane.xlu1 %188 }
 0x1bc   :  { %v181_v39 = vpop.xlane.xlu0 %180  ;;  %v196_v44 = vpop.xlane.xlu1 %195 }
 0x1bd   :  { %v182_v40 = vadd.f32 %v181_v39, %v178_v38 }
 0x1bf   :  { %184 = vst.msk [vmem:[#allocation2] sm:$0xff] %vm183_vm9, %v182_v40 }
 0x1c0   :  { %v204_v47 = vpop.xlane.xlu1 %203 }
 0x1c6   :  { %v185_v42 = vld [vmem:[#allocation2] sm:$0xff] }
 0x1c7   :  { %v190_v43 = vadd.f32 %v189_v41, %v185_v42 }
 0x1c9   :  { %192 = vst.msk [vmem:[#allocation2] sm:$0xff] %vm191_vm10, %v190_v43 }
 0x1d0   :  { %v193_v45 = vld [vmem:[#allocation2] sm:$0xff] }
 0x1d1   :  { %v197_v46 = vadd.f32 %v196_v44, %v193_v45 }
 0x1d3   :  { %199 = vst.msk [vmem:[#allocation2] sm:$0xff] %vm198_vm11, %v197_v46 }
 0x1da   :  { %v200_v48 = vld [vmem:[#allocation2] sm:$0xff] }
 0x1db   :  { %v205_v49 = vadd.f32 %v204_v47, %v200_v48 }
 0x1dd   :  { %207 = vst.msk [vmem:[#allocation2] sm:$0xff] %vm206_vm12, %v205_v49 }
 0x1e4   :  { %v211_v50 = vld [vmem:[#allocation2] sm:$0xff] }
 0x1e5   :  { %v213_v51 = vmax.f32 %v211_v50, 1.0  ;;  %vm212_vm13 = vcmp.gt.f32.partialorder %v211_v50, 0.0 }
 0x1e7   :  { %215 = vrot.lane.b32.xlu1 %v213_v51, %s377_s0 }
 0x259   :  { %v216_v52 = vpop.permute.xlu1 %215 }
 0x25a   :  { %319 = vrcp.f32 %v216_v52 }
 0x264   :  { %v320_v53 = vpop.eup %319 }
 0x265   :  { %v219_v54 = vmul.f32 %v320_v53, %v211_v50 }
 0x267   :  { %221 = vrot.lane.b32.xlu1 %v219_v54, %s378_s3 }
 0x2d9   :  { %v222_v56 = vpop.permute.xlu1 %221 }
 0x2da   :  { %v224_v57 = vsel %vm212_vm13, %v222_v56, 0.0 }
 0x2db   :  { %226 = vrot.lane.b32.xlu1 %v224_v57, %s380_s7 }
 0x34d   :  { %v227_v58 = vpop.permute.xlu1 %226 }
 0x34e   :  { %v229_v59 = vadd.f32 %v227_v58, %v224_v57 }
 0x350   :  { %232 = vperm.xlu0 %306, %v229_v59  }
 0x3cf   :  { %v233_v60 = vpop.permute.xlu0 %232 }
 0x3d0   :  { %235 = vst [vmem:[#allocation6] sm:$0xff] %v233_v60 }
 0x3d1   :  { %354 = shalt.err (!%p351_p12)
}
 0x3d2   :  { %s355_s13 = scalar_lea.hbm %s467_s4, 128 }
 0x3d3   :  { %p356_p13 = scmp.ne.s32.totalorder %s467_s4, %s355_s13  ;;  %p359_p0 = scmp.lt.u32.totalorder %s355_s13, %s467_s4 }
 0x3d5   :  { %p361_p1 = pnand %p359_p0, %p356_p13 }
 0x3d7   :  { %364 = shalt.err (!%p361_p1)
}
 0x3d8   :  { %245 = dma.vmem_to_hbm [thread:$0]  %s243_s9, 128, %s467_s4, [#allocation5]  }
 0x3d9   :  { %367 = dma.done.wait [#allocation5], 128  }
 0x3da   :  { %368 = vsyncadd [#allocation5], 4294967168 }
 0x3db   :  { %249 = vsyncpa [#allocation4], 1 }
 0x3dc   :  { %250 = vsyncpa [#allocation5], 1 }

</bundles_post_ra>
